<compile_context>
chip_gen: v5e
topology: v5e:2x2
jax: 0.10.0
libtpu: 0.0.40
codegen_flags: <defaults>
</compile_context>

<pallas_src>
import functools

import jax
import jax.numpy as jnp
from jax import lax
from jax.experimental import pallas as pl
from jax.experimental.pallas import tpu as pltpu


ITER_N = 5  # Newton-Schulz iterations (matches SqrtmLayer(cov_mat, 5))


def _bmm(a, b):
    """Batched (B, i, j) @ (B, j, k) -> (B, i, k) with f32 accumulation."""
    return jnp.einsum('bij,bjk->bik', a, b, preferred_element_type=jnp.float32)


def _soca_kernel(x_ref, w1_ref, b1_ref, w2_ref, b2_ref, out_ref, *, m_real):
    # x_ref:  (Bb, C, M)   input slab (full spatial axis, no padding)
    # w1_ref: (C, Crp)  b1_ref: (1, Crp)  w2_ref: (Crp, C)  b2_ref: (1, C)
    # out_ref: (Bb, C, M)
    _, C, _ = x_ref.shape
    inv_m = jnp.float32(1.0 / m_real)

    # single 2-D identity; batched consumers broadcast it (no (Bb,C,C) fills).
    r2 = lax.broadcasted_iota(jnp.int32, (C, C), 0)
    c2 = lax.broadcasted_iota(jnp.int32, (C, C), 1)
    eye2 = jnp.where(r2 == c2, 1.0, 0.0).astype(jnp.float32)
    eyeb = eye2[None]                 # (1, C, C) broadcast view
    I3 = 3.0 * eyeb

    # ---- covariance pooling: Sigma = (1/M) X X^T - mu mu^T  (f32 accum) ----
    # consume one ref read here; do NOT keep the slab live across the NS chain.
    X_in = x_ref[...]
    # NOTE: 'bcm,bdm->bcd' contracts on the lane axis of both operands (A A^T);
    # verify with pl.lower_as_mlir that Mosaic does not emit an XLU transpose.
    gram = jnp.einsum('bcm,bdm->bcd', X_in, X_in,
                      preferred_element_type=jnp.float32)                # (Bb,C,C)
    mu = jnp.sum(X_in, axis=2, keepdims=True, dtype=jnp.float32) * inv_m  # (Bb,C,1)
    # move mu from the sublane axis to the lane axis via diag-mask + lane-reduce
    # (cheap VPU/XLU work; avoids a transpose/reshape and a K=1 matmul).
    mu_row = jnp.sum(eyeb * mu, axis=1, keepdims=True)                   # (Bb,1,C)
    Sigma = gram * inv_m - mu * mu_row                                   # (Bb,C,C)

    # ---- Newton-Schulz matrix square root (MPNCOV Sqrtm, iterN=5), in f32 ----
    normA = jnp.sum(jnp.sum(Sigma * eyeb, axis=2, keepdims=True),
                    axis=1, keepdims=True)                               # (Bb,1,1)
    # NOTE: like the PyTorch MPNCOV code, no epsilon guard on the trace.
    A = Sigma * pl.reciprocal(normA)

    ZY = 0.5 * (I3 - A)
    Y = _bmm(A, ZY)
    Z = ZY
    for _ in range(1, ITER_N - 1):
        ZY = 0.5 * (I3 - _bmm(Z, Y))
        Y, Z = _bmm(Y, ZY), _bmm(ZY, Z)
    ZY = 0.5 * _bmm(Y, I3 - _bmm(Z, Y))
    cov_sqrt = ZY * jnp.sqrt(normA)                                      # (Bb,C,C)

    # ---- batched tail: channel stats -> conv_du -> per-channel scaling ----
    # torch.mean(cov_mat_sqrt, dim=1): cov_sqrt is symmetric, so the sublane
    # mean (axis=1) equals it and keeps C on the lane axis.
    v = jnp.mean(cov_sqrt, axis=1)                                       # (Bb, C)
    h = jnp.dot(v, w1_ref[...],
                preferred_element_type=jnp.float32) + b1_ref[...]        # (Bb, Crp)
    h = jnp.maximum(h, 0.0)
    logits = jnp.dot(h, w2_ref[...],
                     preferred_element_type=jnp.float32) + b2_ref[...]   # (Bb, C)
    scale = pl.reciprocal(1.0 + jnp.exp(-logits))                        # sigmoid
    # all scale columns at once: diag-mask + lane-reduce -> (Bb, C, 1)
    scale_cols = jnp.sum(eyeb * scale[:, None, :], axis=2, keepdims=True)
    # fresh ref read for the scaling pass; plain VPU broadcast multiply.
    out_ref[...] = (x_ref[...] * scale_cols.astype(x_ref.dtype)).astype(out_ref.dtype)


def soca_forward(x, w1, b1, w2, b2, *, block_b=None):
    """x: (B, C, H, W) NCHW.  w1: (Cr, C) conv1 1x1 weight, b1: (Cr,),
    w2: (C, Cr) conv2 1x1 weight, b2: (C,).  Returns (B, C, H, W)."""
    B, C, H, W = x.shape
    M = H * W
    Cr = w1.shape[0]
    elem = jnp.dtype(x.dtype).itemsize

    # no spatial padding: block last dim == full array dim M (exempt from the
    # 128-divisibility rule), so no extra HBM pad/trim passes are generated.
    x3 = x.reshape(B, C, M)

    # lane-dense hidden width for conv_du (zero rows/cols contribute nothing;
    # the padded weights are tiny constants).
    Crp = ((Cr + 127) // 128) * 128
    w1_t = jnp.zeros((C, Crp), jnp.float32).at[:, :Cr].set(
        jnp.asarray(w1, jnp.float32).T)
    b1_r = jnp.zeros((1, Crp), jnp.float32).at[:, :Cr].set(
        jnp.asarray(b1, jnp.float32))
    w2_t = jnp.zeros((Crp, C), jnp.float32).at[:Cr, :].set(
        jnp.asarray(w2, jnp.float32).T)
    b2_r = jnp.asarray(b2, jnp.float32).reshape(1, C)

    # generation-aware VMEM budget (v7x: 64 MiB physical, v5e/v6e: 128 MiB).
    try:
        vmem_cap = int(getattr(pltpu.get_tpu_info(), "vmem_capacity_bytes",
                               64 << 20))
    except Exception:  # pragma: no cover - conservative fallback
        vmem_cap = 64 << 20
    budget = int(vmem_cap * 0.60)

    def _footprint(bb):
        slab = bb * C * M * elem
        ns_temps = 16 * bb * C * C * 4          # f32 NS temporaries (generous)
        weights = 2 * (C * Crp + Crp * C + Crp + C) * 4
        return 4 * slab + ns_temps + weights + (2 << 20)

    # block_b is the primary tuning knob: more independent 32/64-wide Newton-
    # Schulz chains per grid step fills the MXU pipeline and amortizes the
    # ~0.35us per-grid-step overhead.  Prefer grid >= 2 so both v7x TCs work.
    if block_b is None:
        candidates = [bb for bb in (16, 8, 4, 2, 1)
                      if B % bb == 0 and _footprint(bb) <= budget]
        multi_core = [bb for bb in candidates if B // bb >= 2]
        if multi_core:
            block_b = multi_core[0]
        elif candidates:
            block_b = candidates[0]
        else:
            block_b = 1
            # TODO(synk): for very large H*W where even a single element
            # overflows VMEM, tile the spatial axis (Sigma-accumulation pass
            # into a VMEM scratch + second streaming pass for the scaling).
    assert B % block_b == 0

    vmem_limit = int(max(32 << 20,
                         min(_footprint(block_b) + (8 << 20),
                             int(vmem_cap * 0.75))))

    kernel = functools.partial(_soca_kernel, m_real=M)
    out = pl.pallas_call(
        kernel,
        out_shape=jax.ShapeDtypeStruct((B, C, M), x.dtype),
        grid_spec=pltpu.PrefetchScalarGridSpec(
            num_scalar_prefetch=0,
            grid=(B // block_b,),
            in_specs=[
                pl.BlockSpec((block_b, C, M), lambda b: (b, 0, 0)),
                pl.BlockSpec((C, Crp), lambda b: (0, 0)),
                pl.BlockSpec((1, Crp), lambda b: (0, 0)),
                pl.BlockSpec((Crp, C), lambda b: (0, 0)),
                pl.BlockSpec((1, C), lambda b: (0, 0)),
            ],
            out_specs=pl.BlockSpec((block_b, C, M), lambda b: (b, 0, 0)),
        ),
        compiler_params=pltpu.CompilerParams(
            dimension_semantics=("parallel",),
            vmem_limit_bytes=vmem_limit),
    )(x3, w1_t, b1_r, w2_t, b2_r)
    return out.reshape(B, C, H, W)


def soca_reference(x, w1, b1, w2, b2):
    """Pure-JAX reference mirroring the PyTorch forward (for verification)."""
    B, C, H, W = x.shape
    M = H * W
    X = x.reshape(B, C, M).astype(jnp.float32)
    I_hat = (-1.0 / M / M) * jnp.ones((M, M)) + (1.0 / M) * jnp.eye(M)
    Sigma = jnp.einsum('bcm,mn,bdn->bcd', X, I_hat, X)
    eyeC = jnp.eye(C)
    I3 = 3.0 * eyeC
    normA = jnp.trace(Sigma, axis1=1, axis2=2)[:, None, None]
    A = Sigma / normA
    ZY = 0.5 * (I3 - A)
    Y = A @ ZY
    Z = ZY
    for _ in range(1, ITER_N - 1):
        ZY = 0.5 * (I3 - Z @ Y)
        Y, Z = Y @ ZY, ZY @ Z
    ZY = 0.5 * (Y @ (I3 - Z @ Y))
    cov_sqrt = ZY * jnp.sqrt(normA)
    v = jnp.mean(cov_sqrt, axis=1)                            # (B, C)
    h = jnp.maximum(v @ w1.T + b1, 0.0)
    scale = jax.nn.sigmoid(h @ w2.T + b2)                     # (B, C)
    return x * scale[:, :, None, None]


if __name__ == "__main__":
    # channel must be >= reduction so conv_du has nonzero hidden channels
    B, C, H, W = 2, 32, 8, 8
    reduction = 8
    Cr = C // reduction

    key = jax.random.PRNGKey(0)
    kx, k1, k2, k3, k4 = jax.random.split(key, 5)
    x = jax.random.normal(kx, (B, C, H, W), dtype=jnp.float32)

    # deterministic synthetic parameters (1x1 conv weights flattened to 2D)
    w1 = 0.1 * jax.random.normal(k1, (Cr, C), dtype=jnp.float32)   # conv1 weight
    b1 = 0.05 * jax.random.normal(k2, (Cr,), dtype=jnp.float32)    # conv1 bias
    w2 = 0.1 * jax.random.normal(k3, (C, Cr), dtype=jnp.float32)   # conv2 weight
    b2 = 0.05 * jax.random.normal(k4, (C,), dtype=jnp.float32)     # conv2 bias

    out = soca_forward(x, w1, b1, w2, b2)
    out = jax.block_until_ready(out)

    ref = soca_reference(x, w1, b1, w2, b2)
    assert out.shape == (B, C, H, W)
    assert jnp.allclose(out, ref, rtol=1e-3, atol=1e-4), (
        float(jnp.max(jnp.abs(out - ref))))

    print("KERNEL_OK")
</pallas_src>

<mosaic_0001>
module attributes {stable_mosaic.version = 11 : i64} {
  func.func @_soca_kernel(%arg0: i32, %arg1: memref<1x32x64xf32, #tpu.memory_space<vmem>>, %arg2: memref<32x128xf32, #tpu.memory_space<vmem>>, %arg3: memref<1x128xf32, #tpu.memory_space<vmem>>, %arg4: memref<128x32xf32, #tpu.memory_space<vmem>>, %arg5: memref<1x32xf32, #tpu.memory_space<vmem>>, %arg6: memref<1x32x64xf32, #tpu.memory_space<vmem>>) attributes {dimension_semantics = [#tpu.dimension_semantics<parallel>], iteration_bounds = array<i64: 2>, scalar_prefetch = 0 : i64, scratch_operands = 0 : i64, tpu.core_type = #tpu.core_type<tc>, window_params = [{transform_indices = @transform_0, window_bounds = array<i64: 1, 32, 64>}, {pipeline_mode = #tpu.pipeline_mode<synchronous>, transform_indices = @transform_1, window_bounds = array<i64: 32, 128>}, {pipeline_mode = #tpu.pipeline_mode<synchronous>, transform_indices = @transform_2, window_bounds = array<i64: 1, 128>}, {pipeline_mode = #tpu.pipeline_mode<synchronous>, transform_indices = @transform_3, window_bounds = array<i64: 128, 32>}, {pipeline_mode = #tpu.pipeline_mode<synchronous>, transform_indices = @transform_4, window_bounds = array<i64: 1, 32>}, {transform_indices = @transform_5, window_bounds = array<i64: 1, 32, 64>}]} {
    %0 = tpu.iota {dimensions = array<i32: 0>} : vector<32x32xi32>
    %1 = tpu.iota {dimensions = array<i32: 1>} : vector<32x32xi32>
    %2 = arith.cmpi eq, %0, %1 : vector<32x32xi32>
    %cst = arith.constant 1.000000e+00 : f32
    %cst_0 = arith.constant 0.000000e+00 : f32
    %3 = vector.broadcast %cst : f32 to vector<32x32xf32>
    %4 = vector.broadcast %cst_0 : f32 to vector<32x32xf32>
    %5 = arith.select %2, %3, %4 : vector<32x32xi1>, vector<32x32xf32>
    %6 = vector.shape_cast %5 : vector<32x32xf32> to vector<1x32x32xf32>
    %cst_1 = arith.constant 3.000000e+00 : f32
    %7 = vector.broadcast %cst_1 : f32 to vector<1x32x32xf32>
    %8 = arith.mulf %7, %6 : vector<1x32x32xf32>
    %c0 = arith.constant 0 : index
    %c0_2 = arith.constant 0 : index
    %c0_3 = arith.constant 0 : index
    %9 = vector.load %arg1[%c0, %c0_2, %c0_3] : memref<1x32x64xf32, #tpu.memory_space<vmem>>, vector<1x32x64xf32>
    "tpu.trace_start"() <{level = 10 : i32, message = "bcm,bdm->bcd"}> : () -> ()
    %cst_4 = arith.constant dense<0.000000e+00> : vector<1x32x32xf32>
    %10 = tpu.matmul %9, %9, %cst_4 {dimension_numbers = #tpu.dot_dimension_numbers<[2], [2], [1], [1], [0, 0, 0, 1, 1, 1], [0], [0]>} : vector<1x32x64xf32>, vector<1x32x64xf32>, vector<1x32x32xf32> -> vector<1x32x32xf32>
    "tpu.trace_stop"() : () -> ()
    %cst_5 = arith.constant dense<0.000000e+00> : vector<1x32xf32>
    %11 = vector.multi_reduction <add>, %9, %cst_5 [2] : vector<1x32x64xf32> to vector<1x32xf32>
    %12 = vector.shape_cast %11 : vector<1x32xf32> to vector<1x32x1xf32>
    %cst_6 = arith.constant 1.562500e-02 : f32
    %13 = vector.broadcast %cst_6 : f32 to vector<1x32x1xf32>
    %14 = arith.mulf %12, %13 : vector<1x32x1xf32>
    %15 = vector.broadcast %14 : vector<1x32x1xf32> to vector<1x32x32xf32>
    %16 = arith.mulf %6, %15 : vector<1x32x32xf32>
    %cst_7 = arith.constant dense<0.000000e+00> : vector<1x32xf32>
    %17 = vector.multi_reduction <add>, %16, %cst_7 [1] : vector<1x32x32xf32> to vector<1x32xf32>
    %18 = vector.shape_cast %17 : vector<1x32xf32> to vector<1x1x32xf32>
    %cst_8 = arith.constant 1.562500e-02 : f32
    %19 = vector.broadcast %cst_8 : f32 to vector<1x32x32xf32>
    %20 = arith.mulf %10, %19 : vector<1x32x32xf32>
    %21 = vector.broadcast %14 : vector<1x32x1xf32> to vector<1x32x32xf32>
    %22 = vector.broadcast %18 : vector<1x1x32xf32> to vector<1x32x32xf32>
    %23 = arith.mulf %21, %22 : vector<1x32x32xf32>
    %24 = arith.subf %20, %23 : vector<1x32x32xf32>
    %25 = arith.mulf %24, %6 : vector<1x32x32xf32>
    %cst_9 = arith.constant dense<0.000000e+00> : vector<1x32xf32>
    %26 = vector.multi_reduction <add>, %25, %cst_9 [2] : vector<1x32x32xf32> to vector<1x32xf32>
    %27 = vector.shape_cast %26 : vector<1x32xf32> to vector<1x32x1xf32>
    %cst_10 = arith.constant dense<0.000000e+00> : vector<1x1xf32>
    %28 = vector.multi_reduction <add>, %27, %cst_10 [1] : vector<1x32x1xf32> to vector<1x1xf32>
    %29 = vector.shape_cast %28 : vector<1x1xf32> to vector<1x1x1xf32>
    %30 = tpu.reciprocal %29 : vector<1x1x1xf32> -> vector<1x1x1xf32>
    %31 = vector.broadcast %30 : vector<1x1x1xf32> to vector<1x32x32xf32>
    %32 = arith.mulf %24, %31 : vector<1x32x32xf32>
    %33 = arith.subf %8, %32 : vector<1x32x32xf32>
    %cst_11 = arith.constant 5.000000e-01 : f32
    %34 = vector.broadcast %cst_11 : f32 to vector<1x32x32xf32>
    %35 = arith.mulf %34, %33 : vector<1x32x32xf32>
    "tpu.trace_start"() <{level = 10 : i32, message = "bij,bjk->bik"}> : () -> ()
    %cst_12 = arith.constant dense<0.000000e+00> : vector<1x32x32xf32>
    %36 = tpu.matmul %32, %35, %cst_12 {dimension_numbers = #tpu.dot_dimension_numbers<[2], [1], [1], [2], [0, 0, 0, 1, 1, 2], [0], [0]>} : vector<1x32x32xf32>, vector<1x32x32xf32>, vector<1x32x32xf32> -> vector<1x32x32xf32>
    %cst_13 = arith.constant dense<0.000000e+00> : vector<1x32x32xf32>
    %37 = tpu.matmul %35, %36, %cst_13 {dimension_numbers = #tpu.dot_dimension_numbers<[2], [1], [1], [2], [0, 0, 0, 1, 1, 2], [0], [0]>} : vector<1x32x32xf32>, vector<1x32x32xf32>, vector<1x32x32xf32> -> vector<1x32x32xf32>
    "tpu.trace_stop"() : () -> ()
    %38 = arith.subf %8, %37 : vector<1x32x32xf32>
    %cst_14 = arith.constant 5.000000e-01 : f32
    %39 = vector.broadcast %cst_14 : f32 to vector<1x32x32xf32>
    %40 = arith.mulf %39, %38 : vector<1x32x32xf32>
    "tpu.trace_start"() <{level = 10 : i32, message = "bij,bjk->bik"}> : () -> ()
    %cst_15 = arith.constant dense<0.000000e+00> : vector<1x32x32xf32>
    %41 = tpu.matmul %36, %40, %cst_15 {dimension_numbers = #tpu.dot_dimension_numbers<[2], [1], [1], [2], [0, 0, 0, 1, 1, 2], [0], [0]>} : vector<1x32x32xf32>, vector<1x32x32xf32>, vector<1x32x32xf32> -> vector<1x32x32xf32>
    %cst_16 = arith.constant dense<0.000000e+00> : vector<1x32x32xf32>
    %42 = tpu.matmul %40, %35, %cst_16 {dimension_numbers = #tpu.dot_dimension_numbers<[2], [1], [1], [2], [0, 0, 0, 1, 1, 2], [0], [0]>} : vector<1x32x32xf32>, vector<1x32x32xf32>, vector<1x32x32xf32> -> vector<1x32x32xf32>
    %cst_17 = arith.constant dense<0.000000e+00> : vector<1x32x32xf32>
    %43 = tpu.matmul %42, %41, %cst_17 {dimension_numbers = #tpu.dot_dimension_numbers<[2], [1], [1], [2], [0, 0, 0, 1, 1, 2], [0], [0]>} : vector<1x32x32xf32>, vector<1x32x32xf32>, vector<1x32x32xf32> -> vector<1x32x32xf32>
    "tpu.trace_stop"() : () -> ()
    %44 = arith.subf %8, %43 : vector<1x32x32xf32>
    %cst_18 = arith.constant 5.000000e-01 : f32
    %45 = vector.broadcast %cst_18 : f32 to vector<1x32x32xf32>
    %46 = arith.mulf %45, %44 : vector<1x32x32xf32>
    "tpu.trace_start"() <{level = 10 : i32, message = "bij,bjk->bik"}> : () -> ()
    %cst_19 = arith.constant dense<0.000000e+00> : vector<1x32x32xf32>
    %47 = tpu.matmul %41, %46, %cst_19 {dimension_numbers = #tpu.dot_dimension_numbers<[2], [1], [1], [2], [0, 0, 0, 1, 1, 2], [0], [0]>} : vector<1x32x32xf32>, vector<1x32x32xf32>, vector<1x32x32xf32> -> vector<1x32x32xf32>
    %cst_20 = arith.constant dense<0.000000e+00> : vector<1x32x32xf32>
    %48 = tpu.matmul %46, %42, %cst_20 {dimension_numbers = #tpu.dot_dimension_numbers<[2], [1], [1], [2], [0, 0, 0, 1, 1, 2], [0], [0]>} : vector<1x32x32xf32>, vector<1x32x32xf32>, vector<1x32x32xf32> -> vector<1x32x32xf32>
    %cst_21 = arith.constant dense<0.000000e+00> : vector<1x32x32xf32>
    %49 = tpu.matmul %48, %47, %cst_21 {dimension_numbers = #tpu.dot_dimension_numbers<[2], [1], [1], [2], [0, 0, 0, 1, 1, 2], [0], [0]>} : vector<1x32x32xf32>, vector<1x32x32xf32>, vector<1x32x32xf32> -> vector<1x32x32xf32>
    "tpu.trace_stop"() : () -> ()
    %50 = arith.subf %8, %49 : vector<1x32x32xf32>
    %cst_22 = arith.constant 5.000000e-01 : f32
    %51 = vector.broadcast %cst_22 : f32 to vector<1x32x32xf32>
    %52 = arith.mulf %51, %50 : vector<1x32x32xf32>
    "tpu.trace_start"() <{level = 10 : i32, message = "bij,bjk->bik"}> : () -> ()
    %cst_23 = arith.constant dense<0.000000e+00> : vector<1x32x32xf32>
    %53 = tpu.matmul %47, %52, %cst_23 {dimension_numbers = #tpu.dot_dimension_numbers<[2], [1], [1], [2], [0, 0, 0, 1, 1, 2], [0], [0]>} : vector<1x32x32xf32>, vector<1x32x32xf32>, vector<1x32x32xf32> -> vector<1x32x32xf32>
    %cst_24 = arith.constant dense<0.000000e+00> : vector<1x32x32xf32>
    %54 = tpu.matmul %52, %48, %cst_24 {dimension_numbers = #tpu.dot_dimension_numbers<[2], [1], [1], [2], [0, 0, 0, 1, 1, 2], [0], [0]>} : vector<1x32x32xf32>, vector<1x32x32xf32>, vector<1x32x32xf32> -> vector<1x32x32xf32>
    %cst_25 = arith.constant dense<0.000000e+00> : vector<1x32x32xf32>
    %55 = tpu.matmul %54, %53, %cst_25 {dimension_numbers = #tpu.dot_dimension_numbers<[2], [1], [1], [2], [0, 0, 0, 1, 1, 2], [0], [0]>} : vector<1x32x32xf32>, vector<1x32x32xf32>, vector<1x32x32xf32> -> vector<1x32x32xf32>
    "tpu.trace_stop"() : () -> ()
    %56 = arith.subf %8, %55 : vector<1x32x32xf32>
    "tpu.trace_start"() <{level = 10 : i32, message = "bij,bjk->bik"}> : () -> ()
    %cst_26 = arith.constant dense<0.000000e+00> : vector<1x32x32xf32>
    %57 = tpu.matmul %53, %56, %cst_26 {dimension_numbers = #tpu.dot_dimension_numbers<[2], [1], [1], [2], [0, 0, 0, 1, 1, 2], [0], [0]>} : vector<1x32x32xf32>, vector<1x32x32xf32>, vector<1x32x32xf32> -> vector<1x32x32xf32>
    "tpu.trace_stop"() : () -> ()
    %cst_27 = arith.constant 5.000000e-01 : f32
    %58 = vector.broadcast %cst_27 : f32 to vector<1x32x32xf32>
    %59 = arith.mulf %58, %57 : vector<1x32x32xf32>
    %60 = math.sqrt %29 : vector<1x1x1xf32>
    %61 = vector.broadcast %60 : vector<1x1x1xf32> to vector<1x32x32xf32>
    %62 = arith.mulf %59, %61 : vector<1x32x32xf32>
    %cst_28 = arith.constant dense<0.000000e+00> : vector<1x32xf32>
    %63 = vector.multi_reduction <add>, %62, %cst_28 [1] : vector<1x32x32xf32> to vector<1x32xf32>
    %cst_29 = arith.constant 3.200000e+01 : f32
    %64 = vector.broadcast %cst_29 : f32 to vector<1x32xf32>
    %65 = arith.divf %63, %64 : vector<1x32xf32>
    %c0_30 = arith.constant 0 : index
    %c0_31 = arith.constant 0 : index
    %66 = vector.load %arg2[%c0_30, %c0_31] : memref<32x128xf32, #tpu.memory_space<vmem>>, vector<32x128xf32>
    %cst_32 = arith.constant dense<0.000000e+00> : vector<1x128xf32>
    %67 = tpu.matmul %65, %66, %cst_32 {dimension_numbers = #tpu.dot_dimension_numbers<[1], [0], [0], [1], [0, 0, 1, 1], [], []>} : vector<1x32xf32>, vector<32x128xf32>, vector<1x128xf32> -> vector<1x128xf32>
    %c0_33 = arith.constant 0 : index
    %c0_34 = arith.constant 0 : index
    %68 = vector.load %arg3[%c0_33, %c0_34] : memref<1x128xf32, #tpu.memory_space<vmem>>, vector<1x128xf32>
    %69 = arith.addf %67, %68 : vector<1x128xf32>
    %cst_35 = arith.constant 0.000000e+00 : f32
    %70 = vector.broadcast %cst_35 : f32 to vector<1x128xf32>
    %71 = arith.maximumf %69, %70 : vector<1x128xf32>
    %c0_36 = arith.constant 0 : index
    %c0_37 = arith.constant 0 : index
    %72 = vector.load %arg4[%c0_36, %c0_37] : memref<128x32xf32, #tpu.memory_space<vmem>>, vector<128x32xf32>
    %cst_38 = arith.constant dense<0.000000e+00> : vector<1x32xf32>
    %73 = tpu.matmul %71, %72, %cst_38 {dimension_numbers = #tpu.dot_dimension_numbers<[1], [0], [0], [1], [0, 0, 1, 1], [], []>} : vector<1x128xf32>, vector<128x32xf32>, vector<1x32xf32> -> vector<1x32xf32>
    %c0_39 = arith.constant 0 : index
    %c0_40 = arith.constant 0 : index
    %74 = vector.load %arg5[%c0_39, %c0_40] : memref<1x32xf32, #tpu.memory_space<vmem>>, vector<1x32xf32>
    %75 = arith.addf %73, %74 : vector<1x32xf32>
    %cst_41 = arith.constant 0.000000e+00 : f32
    %76 = vector.broadcast %cst_41 : f32 to vector<1x32xf32>
    %77 = arith.subf %76, %75 : vector<1x32xf32>
    %78 = math.exp %77 : vector<1x32xf32>
    %cst_42 = arith.constant 1.000000e+00 : f32
    %79 = vector.broadcast %cst_42 : f32 to vector<1x32xf32>
    %80 = arith.addf %79, %78 : vector<1x32xf32>
    %81 = tpu.reciprocal %80 : vector<1x32xf32> -> vector<1x32xf32>
    %82 = vector.shape_cast %81 : vector<1x32xf32> to vector<1x1x32xf32>
    %83 = vector.broadcast %82 : vector<1x1x32xf32> to vector<1x32x32xf32>
    %84 = arith.mulf %6, %83 : vector<1x32x32xf32>
    %cst_43 = arith.constant dense<0.000000e+00> : vector<1x32xf32>
    %85 = vector.multi_reduction <add>, %84, %cst_43 [2] : vector<1x32x32xf32> to vector<1x32xf32>
    %86 = vector.shape_cast %85 : vector<1x32xf32> to vector<1x32x1xf32>
    %c0_44 = arith.constant 0 : index
    %c0_45 = arith.constant 0 : index
    %c0_46 = arith.constant 0 : index
    %87 = vector.load %arg1[%c0_44, %c0_45, %c0_46] : memref<1x32x64xf32, #tpu.memory_space<vmem>>, vector<1x32x64xf32>
    %88 = vector.broadcast %86 : vector<1x32x1xf32> to vector<1x32x64xf32>
    %89 = arith.mulf %87, %88 : vector<1x32x64xf32>
    %c0_47 = arith.constant 0 : index
    %c0_48 = arith.constant 0 : index
    %c0_49 = arith.constant 0 : index
    %90 = vector.load %arg6[%c0_47, %c0_48, %c0_49] : memref<1x32x64xf32, #tpu.memory_space<vmem>>, vector<1x32x64xf32>
    tpu.vector_store %arg6[%c0_47, %c0_48, %c0_49], %89 {strides = array<i32>} : memref<1x32x64xf32, #tpu.memory_space<vmem>>, vector<1x32x64xf32>,
    return
  }
  func.func @transform_0(%arg0: i32) -> (i32, i32, i32) {
    %c0_i32 = arith.constant 0 : i32
    %c0_i32_0 = arith.constant 0 : i32
    %c0_i32_1 = arith.constant 0 : i32
    return %arg0, %c0_i32, %c0_i32_0 : i32, i32, i32
  }
  func.func @transform_1(%arg0: i32) -> (i32, i32) {
    %c0_i32 = arith.constant 0 : i32
    %c0_i32_0 = arith.constant 0 : i32
    %c0_i32_1 = arith.constant 0 : i32
    return %c0_i32, %c0_i32_0 : i32, i32
  }
  func.func @transform_2(%arg0: i32) -> (i32, i32) {
    %c0_i32 = arith.constant 0 : i32
    %c0_i32_0 = arith.constant 0 : i32
    %c0_i32_1 = arith.constant 0 : i32
    return %c0_i32, %c0_i32_0 : i32, i32
  }
  func.func @transform_3(%arg0: i32) -> (i32, i32) {
    %c0_i32 = arith.constant 0 : i32
    %c0_i32_0 = arith.constant 0 : i32
    %c0_i32_1 = arith.constant 0 : i32
    return %c0_i32, %c0_i32_0 : i32, i32
  }
  func.func @transform_4(%arg0: i32) -> (i32, i32) {
    %c0_i32 = arith.constant 0 : i32
    %c0_i32_0 = arith.constant 0 : i32
    %c0_i32_1 = arith.constant 0 : i32
    return %c0_i32, %c0_i32_0 : i32, i32
  }
  func.func @transform_5(%arg0: i32) -> (i32, i32, i32) {
    %c0_i32 = arith.constant 0 : i32
    %c0_i32_0 = arith.constant 0 : i32
    %c0_i32_1 = arith.constant 0 : i32
    return %arg0, %c0_i32, %c0_i32_0 : i32, i32, i32
  }
}

</mosaic_0001>

<bundles_post_ra>
// kernel: tpu_custom_call.1
= control target key start
LH: loop header
LB: loop body
LE: loop exit
PB: predicated region body
PF: predicated region fallthrough
CT: control target
= control target key end

     0   :  { %10 = vsyncpa [#allocation3], 0  ;;  %s1685_s0 = inlined_call_operand.vmem [shape: f32[2,32,64], index: 0, kind: input, shape index: {}]   ;;  %s1686_s1 = inlined_call_operand.vmem [shape: f32[32,128], index: 1, kind: input, shape index: {}]   ;;  %s1687_s2 = inlined_call_operand.vmem [shape: f32[1,128], index: 2, kind: input, shape index: {}]   ;;  %s1688_s3 = inlined_call_operand.vmem [shape: f32[128,32], index: 3, kind: input, shape index: {}]   ;;  %s1689_s4 = inlined_call_operand.vmem [shape: f32[1,32], index: 4, kind: input, shape index: {}]   ;;  %s1690_s5 = inlined_call_operand.hbm [shape: f32[2,32,64], index: 5, kind: output, shape index: {}]  }
   0x1   :  { %12 = vsyncpa [#allocation3 + $0x1], 0  ;;  %s1367_s18 = smov 0   ;;  %s1369_s19 = smov 0  }
   0x2   :  { %s1371_s20 = smov 0   ;;  %s1373_s21 = smov 0  }
   0x3 LB: > { %s1388_s22 = sadd.s32 4294967295, %s1331_s21   ;;  %s1137_s23 = sadd.s32 4294967294, %s1331_s21   ;;  %s1331_s21 = sphi %s1373_s21, %s1696_s21   ;;  %s1327_s20 = sphi %s1371_s20, %s1695_s20   ;;  %s1323_s19 = sphi %s1369_s19, %s1694_s19   ;;  %s1319_s18 = sphi %s1367_s18, %s1693_s18  }
   0x4   : > { %s1392_s24 = sadd.s32 1, %s1331_s21   ;;  %s135_s25 = sadd.s32 1, %s1327_s20 }
   0x5   : > { %s132_s26 = ssub.s32 %s1331_s21, %s1392_s24  ;;  %p145_p0 = scmp.ne.s32.totalorder %s1327_s20, %s1323_s19 }
   0x6   : > { %p133_p1 = scmp.eq.s32.totalorder %s132_s26, 0  ;;  %p146_p2 = scmp.eq.s32.totalorder %s1388_s22, 1 }
   0x7   : > { %p151_p3 = scmp.ne.s32.totalorder %s1323_s19, %s1319_s18  ;;  %p152_p4 = scmp.eq.s32.totalorder %s1137_s23, 1 }
   0x8   : > { %s1403_s27 = scalar_select %p133_p1, %s1327_s20, %s135_s25  }
   0x9   : > { %p1405_p5 = por %p146_p2, %p145_p0  ;;  %p1409_p6 = por %p152_p4, %p151_p3 }
   0xa   : > { %p1140_p7 = scmp.ge.s32.totalorder %s1331_s21, 1  ;;  %p190_p8 = scmp.lt.s32.totalorder %s1331_s21, 3 }
   0xc   : > { %p191_p9 = pnand %p1140_p7, %p190_p8 }
   0xd   : > { %p218_p10 = scmp.lt.s32.totalorder (!%p191_p9), %s1388_s22, 1  ;;  %s1207_s8 = sshll.u32 (!%p191_p9), %s1388_s22, 5 }
   0xe   : > { %194 = sbr.rel (%p191_p9) target bundleno = 2246 (0x8c6), region = 40  ;;  %s1071_s12 = scalar_lea.hbm (!%p191_p9), %s1690_s5, %s1207_s8 }
   0xf   : > { %s1074_s14 = sshll.u32 (!%p191_p9), %s1071_s12, 4  ;;  %s1289_s25 = scalar_lea.hbm (!%p191_p9), %s1690_s5, 64  ;;  %s1075_s14 = int_to_ptr.hbm [resolvable:$true] %s1074_s14 }
  0x10   : > { %s1283_s15 = sshra.s32 (!%p191_p9), %s1075_s14, 4  ;;  %s1284_s15 = int_to_ptr.hbm [resolvable:$true] %s1283_s15 }
  0x11   : > { %s1285_s16 = scalar_lea.hbm (!%p191_p9), %s1284_s15, 32  ;;  %p1290_p0 = scmp.lt.s32.totalorder (!%p191_p9), %s1284_s15, %s1690_s5 }
  0x12   : > { %p1286_p11 = scmp.ne.s32.totalorder (!%p191_p9), %s1284_s15, %s1285_s16  ;;  %p1291_p1 = scmp.lt.s32.totalorder (!%p191_p9), %s1289_s25, %s1285_s16 }
  0x13   : > { %s219_s30 = scalar_select %p218_p10, %s1388_s22, 1  ;;  %vm246_vm0 = vcmask 523264   ;;  %v223_v8 = vlaneseq  ;;  %v1333_v18 = vmov 0.0   ;;  %vm308_vm5 = vcmask 261120  }
  0x14   : > { %p1287_p12 = pnand %p1286_p11, %p1405_p5  ;;  %p1292_p2 = por %p1291_p1, %p1290_p0 }
  0x15   : > { %s1206_s6 = sshll.u32 %s219_s30, 5  ;;  %v224_v9 = vshrl.u32 %v223_v8, 7  ;;  %v229_v10 = vand.u32 127, %v223_v8 }
  0x16   : > { %s222_s9 = scalar_lea.vmem %s1685_s0, %s1206_s6  ;;  %s215_s6 = sand.u32 1, %s1323_s19  }
  0x17   : > { %v1420_v0 = vld [vmem:[%s222_s9 + $0x18] sm:$0xff]  ;;  %v1422_v1 = vld [vmem:[%s222_s9] sm:$0xff]  ;;  %v1424_v2 = vld [vmem:[%s222_s9 + $0x10] sm:$0xff]  ;;  %v226_v11 = vadd.s32 16, %v224_v9  ;;  %v225_v14 = vadd.s32 8, %v224_v9  ;;  %v227_v15 = vadd.s32 24, %v224_v9  ;;  %vm230_vm1 = vcmp.eq.s32.totalorder %v224_v9, %v229_v10  ;;  %p1288_p13 = pneg %p1287_p12 }
  0x18   : > { %1144 = vmatpush.xpose.msk.msra.mxu0 %vm246_vm0, %v1420_v0  ;;  %v288_v3 = vsel %vm246_vm0, %v1422_v1, 0.0  ;;  %v294_v4 = vsel %vm246_vm0, %v1424_v2, 0.0  ;;  %v1432_v5 = vld [vmem:[%s222_s9 + $0x8] sm:$0xff]  ;;  %v297_v7 = vsel %vm246_vm0, %v1420_v0, 0.0  ;;  %v1452_v19 = vsel %vm230_vm1, 1.0, %v1333_v18  ;;  %s1141_s7 = sshll.u32 %s215_s6, 5 }
  0x19   : > { %289 = vadd.xlane.f32.xlu0 %v288_v3  ;;  %295 = vadd.xlane.f32.xlu1 %v294_v4  ;;  %v291_v6 = vsel %vm246_vm0, %v1432_v5, 0.0  ;;  %vm232_vm2 = vcmp.eq.s32.totalorder %v226_v11, %v229_v10  ;;  %vm231_vm3 = vcmp.eq.s32.totalorder %v225_v14, %v229_v10  ;;  %vm233_vm4 = vcmp.eq.s32.totalorder %v227_v15, %v229_v10  ;;  %s217_s9 = scalar_lea.vmem [#allocation2], %s1141_s7  ;;  %s1060_s22 = scalar_lea.sflag [#allocation3], %s215_s6 }
  0x1a   : > { %v1454_v20 = vsel %vm232_vm2, 1.0, %v1333_v18  ;;  %v1456_v21 = vsel %vm231_vm3, 1.0, %v1333_v18  ;;  %v1458_v23 = vsel %vm233_vm4, 1.0, %v1333_v18  ;;  %s1072_s13 = sshll.u32 %s217_s9, 4  ;;  %p1293_p3 = pnand %p1292_p2, %p1288_p13  ;;  %s1073_s13 = int_to_ptr.vmem [resolvable:$true] %s1072_s13 }
  0x1c   : > { %1145 = vmatpush.xpose.msk.msra.mxu0 %vm246_vm0, %v1424_v2 }
  0x20   : > { %1146 = vmatpush.xpose.msk.msra.mxu0 %vm246_vm0, %v1432_v5 }
  0x21   : > { %292 = vadd.xlane.f32.xlu0 %v291_v6  ;;  %298 = vadd.xlane.f32.xlu1 %v297_v7 }
  0x24   : > { %1147 = vmatpush.xpose.msk.msra.mxu0 %vm246_vm0, %v1422_v1 }
  0x27   : > { %1148 = vmatmul.msk.f32.vlgmr.msra.gmra.mxu0 %vm246_vm0, %v1422_v1 }
  0x2f   : > { %1149 = vmatmul.msk.f32.gmra.mxu0 %vm246_vm0, %v1432_v5 }
  0x37   : > { %1150 = vmatmul.msk.f32.gmra.mxu0 %vm246_vm0, %v1424_v2 }
  0x3f   : > { %1151 = vmatmul.msk.f32.gmra.mxu0 %vm246_vm0, %v1420_v0 }
  0x8c   : > { %v290_v12 = vpop.xlane.xlu0 %289  ;;  %v296_v13 = vpop.xlane.xlu1 %295 }
  0x8d   : > { %v300_v16 = vmul.f32 0.015625, %v290_v12  ;;  %v302_v17 = vmul.f32 0.015625, %v296_v13 }
  0x8f   : > { %v304_v25 = vmul.f32 %v300_v16, %v1452_v19  ;;  %v306_v26 = vmul.f32 %v302_v17, %v1454_v20 }
  0x91   : > { %v309_v31 = vsel %vm308_vm5, %v304_v25, 0.0  ;;  %v312_v32 = vsel %vm308_vm5, %v306_v26, 0.0 }
  0x94   : > { %v293_v22 = vpop.xlane.xlu0 %292  ;;  %v299_v24 = vpop.xlane.xlu1 %298 }
  0x95   : > { %v301_v27 = vmul.f32 0.015625, %v293_v22  ;;  %v303_v28 = vmul.f32 0.015625, %v299_v24 }
  0x97   : > { %v305_v29 = vmul.f32 %v301_v27, %v1456_v21  ;;  %v307_v30 = vmul.f32 %v303_v28, %v1458_v23 }
  0x99   : > { %v310_v33 = vsel %vm308_vm5, %v305_v29, 0.0  ;;  %v314_v35 = vsel %vm308_vm5, %v307_v30, 0.0 }
  0x9a   : > { %v311_v34 = vadd.f32 %v310_v33, %v309_v31 }
  0x9c   : > { %v313_v36 = vadd.f32 %v312_v32, %v311_v34 }
  0x9e   : > { %v315_v37 = vadd.f32 %v314_v35, %v313_v36 }
  0xa0   : > { %v316_v38 = vrot.slane %v315_v37, 4 }
  0xa2   : > { %v317_v39 = vadd.f32 %v316_v38, %v315_v37  ;;  %v1480_v38 = vmul.f32 3.0, %v1454_v20 }
  0xa4   : > { %v318_v40 = vrot.slane %v317_v39, 2  ;;  %v276_v41 = vpop.f32.mrf.mxu0 }
  0xa5   : > { %v322_v45 = vmul.f32 0.015625, %v276_v41 }
  0xa6   : > { %v319_v42 = vadd.f32 %v318_v40, %v317_v39  ;;  %v1483_v39 = vmul.f32 3.0, %v1458_v23 }
  0xa8   : > { %v320_v43 = vrot.slane %v319_v42, 1 }
  0xaa   : > { %v321_v44 = vadd.f32 %v320_v43, %v319_v42  ;;  %v1486_v43 = vmul.f32 3.0, %v1456_v21 }
  0xac   : > { %v326_v46 = vmul.f32 %v321_v44, %v300_v16  ;;  %v279_v47 = vpop.f32.mrf.mxu0  ;;  %v327_v50 = vmul.f32 %v321_v44, %v301_v27  ;;  %v328_v56 = vmul.f32 %v321_v44, %v302_v17  ;;  %v329_v63 = vmul.f32 %v321_v44, %v303_v28 }
  0xad   : > { %v323_v49 = vmul.f32 0.015625, %v279_v47  ;;  %v1489_v47 = vmul.f32 3.0, %v1452_v19 }
  0xae   : > { %v1468_v48 = vsub.f32 %v322_v45, %v326_v46 }
  0xaf   : > { %v331_v52 = vsub.f32 %v323_v49, %v327_v50 }
  0xb0   : > { %v334_v51 = vmul.f32 %v1468_v48, %v1452_v19 }
  0xb1   : > { %v335_v57 = vmul.f32 %v331_v52, %v1456_v21 }
  0xb2   : > { %v338_v53 = vsel %vm308_vm5, %v334_v51, 0.0 }
  0xb3   : > { %339 = vadd.xlane.f32.xlu2 %v338_v53  ;;  %v341_v60 = vsel %vm308_vm5, %v335_v57, 0.0 }
  0xb4   : > { %v282_v54 = vpop.f32.mrf.mxu0 }
  0xb5   : > { %v324_v55 = vmul.f32 0.015625, %v282_v54 }
  0xb7   : > { %v332_v58 = vsub.f32 %v324_v55, %v328_v56 }
  0xb9   : > { %v336_v59 = vmul.f32 %v332_v58, %v1454_v20 }
  0xbb   : > { %342 = vadd.xlane.f32.xlu2 %v341_v60  ;;  %v344_v61 = vsel %vm308_vm5, %v336_v59, 0.0 }
  0xbc   : > { %345 = vadd.xlane.f32.xlu0 %v344_v61  ;;  %v285_v62 = vpop.f32.mrf.mxu0 }
  0xbd   : > { %v325_v3 = vmul.f32 0.015625, %v285_v62 }
  0xbf   : > { %v333_v4 = vsub.f32 %v325_v3, %v329_v63 }
  0xc1   : > { %v337_v6 = vmul.f32 %v333_v4, %v1458_v23 }
  0xc3   : > { %v347_v7 = vsel %vm308_vm5, %v337_v6, 0.0 }
  0xc4   : > { %348 = vadd.xlane.f32.xlu1 %v347_v7 }
 0x126   : > { %v340_v8 = vpop.xlane.xlu2 %339 }
 0x12e   : > { %v343_v9 = vpop.xlane.xlu2 %342 }
 0x12f   : > { %v350_v10 = vadd.f32 %v343_v9, %v340_v8  ;;  %v346_v11 = vpop.xlane.xlu0 %345 }
 0x131   : > { %v351_v12 = vadd.f32 %v350_v10, %v346_v11 }
 0x137   : > { %v349_v13 = vpop.xlane.xlu1 %348 }
 0x138   : > { %v352_v14 = vadd.f32 %v351_v12, %v349_v13 }
 0x13a   : > { %v353_v15 = vrot.slane %v352_v14, 4 }
 0x13c   : > { %v354_v16 = vadd.f32 %v353_v15, %v352_v14 }
 0x13e   : > { %v355_v17 = vrot.slane %v354_v16, 2 }
 0x140   : > { %v356_v18 = vadd.f32 %v355_v17, %v354_v16 }
 0x142   : > { %v357_v22 = vrot.slane %v356_v18, 1 }
 0x144   : > { %v358_v24 = vadd.f32 %v357_v22, %v356_v18 }
 0x146   : > { %1259 = vrcp.f32 %v358_v24  ;;  %v370_v30 = vand.u32 2147483648, %v358_v24  ;;  %v368_v33 = vand.u32 2147483647, %v358_v24  ;;  %vm364_vm7 = vweird.f32 %v358_v24 }
 0x147   : > { %1261 = vrsqrt.f32 %v358_v24  ;;  %vm916_vm10 = vcmp.eq.f32.partialorder %v358_v24, inf  ;;  %vm918_vm11 = vcmp.eq.f32.partialorder %v358_v24, 0.0 }
 0x148   : > { %v371_v36 = vor.u32 1.1754944e-38, %v370_v30  ;;  %vm369_vm9 = vcmp.eq.f32.partialorder %v368_v33, 8.507059e+37 }
 0x14c   : > { %v1260_v25 = vpop.eup %1259 }
 0x14d   : > { %v1262_v26 = vpop.eup %1261  ;;  %v360_v27 = vmul.f32 %v1260_v25, %v358_v24  ;;  %vm365_vm6 = vweird.f32 %v1260_v25 }
 0x14e   : > { %v910_v28 = vmul.f32 %v1262_v26, %v358_v24  ;;  %vm366_vm8 = vmor %vm364_vm7, %vm365_vm6 }
 0x14f   : > { %v361_v29 = vsub.f32 1.0, %v360_v27 }
 0x150   : > { %v911_v31 = vmul.f32 %v1262_v26, %v910_v28 }
 0x151   : > { %v362_v32 = vmul.f32 %v1260_v25, %v361_v29 }
 0x152   : > { %v912_v34 = vmul.f32 0.5, %v911_v31 }
 0x153   : > { %v363_v35 = vadd.f32 %v1260_v25, %v362_v32 }
 0x154   : > { %v913_v37 = vsub.f32 1.5, %v912_v34 }
 0x155   : > { %v367_v40 = vsel %vm366_vm8, %v1260_v25, %v363_v35 }
 0x156   : > { %v372_v41 = vsel %vm369_vm9, %v371_v36, %v367_v40  ;;  %v914_v42 = vmul.f32 %v1262_v26, %v913_v37 }
 0x157   : > { %v376_v44 = vmul.f32 %v372_v41, %v333_v4  ;;  %v375_v45 = vmul.f32 %v372_v41, %v332_v58  ;;  %v374_v46 = vmul.f32 %v372_v41, %v331_v52  ;;  %v373_v53 = vmul.f32 %v372_v41, %v1468_v48 }
 0x158   : > { %v915_v49 = vmul.f32 %v914_v42, %v358_v24 }
 0x159   : > { %v380_v50 = vsub.f32 %v1483_v39, %v376_v44  ;;  %v379_v51 = vsub.f32 %v1480_v38, %v375_v45  ;;  %v378_v56 = vsub.f32 %v1486_v43, %v374_v46  ;;  %v377_v58 = vsub.f32 %v1489_v47, %v373_v53 }
 0x15a   : > { %v917_v54 = vsel %vm916_vm10, %v358_v24, %v915_v49 }
 0x15b   : > { %v384_v55 = vmul.f32 0.5, %v380_v50  ;;  %v1495_v57 = vsel %vm918_vm11, %v370_v30, %v917_v54  ;;  %v383_v52 = vmul.f32 0.5, %v379_v51  ;;  %v382_v59 = vmul.f32 0.5, %v378_v56 }
 0x15c   : > { %v381_v48 = vmul.f32 0.5, %v377_v58 }
 0x15d   : > { %409 = vmatpush.msrb.mxu0 %v384_v55  ;;  %1208 = vmatpush.msra.mxu1 %v384_v55 }
 0x15e   : > { %1209 = vmatpush.msra.mxu2 %v384_v55 }
 0x15f   : > { %410 = vmatpush.msrb.mxu0 %v383_v52  ;;  %1210 = vmatpush.msra.mxu1 %v383_v52 }
 0x160   : > { %1211 = vmatpush.msra.mxu2 %v383_v52 }
 0x161   : > { %411 = vmatpush.msrb.mxu0 %v382_v59  ;;  %1212 = vmatpush.msra.mxu1 %v382_v59 }
 0x162   : > { %1213 = vmatpush.msra.mxu2 %v382_v59 }
 0x163   : > { %412 = vmatpush.msrb.mxu0 %v381_v48  ;;  %1214 = vmatpush.msra.mxu1 %v381_v48 }
 0x164   : > { %1215 = vmatpush.msra.mxu2 %v381_v48  ;;  %1152 = vmatmul.msk.f32.vlgmr.msrb.gmra.mxu0 %vm308_vm5, %v373_v53 }
 0x165   : > { %1153 = vmatmul.msk.f32.vlgmr.msra.gmra.mxu1 %vm308_vm5, %v374_v46  ;;  %1155 = vmatmul.msk.f32.vlgmr.msra.gmra.mxu2 %vm308_vm5, %v376_v44 }
 0x166   : > { %540 = vmatpush.msrb.mxu1 %v384_v55 }
 0x168   : > { %541 = vmatpush.msrb.mxu1 %v383_v52 }
 0x16a   : > { %542 = vmatpush.msrb.mxu1 %v382_v59 }
 0x16c   : > { %543 = vmatpush.msrb.mxu1 %v381_v48 }
 0x16d   : > { %1154 = vmatmul.msk.f32.gmra.mxu1 %vm308_vm5, %v375_v45 }
 0x1e1   : > { %v414_v63 = vpop.f32.mrf.mxu0 }
 0x1e2   : > { %v417_v60 = vpop.f32.mrf.mxu1 }
 0x1e8   : > { %v423_v61 = vpop.f32.mrf.mxu2 }
 0x1e9   : > { %450 = vmatpush.msrb.mxu2 %v423_v61 }
 0x1ea   : > { %v420_v62 = vpop.f32.mrf.mxu1 }
 0x1eb   : > { %451 = vmatpush.msrb.mxu2 %v420_v62 }
 0x1ed   : > { %452 = vmatpush.msrb.mxu2 %v417_v60 }
 0x1ef   : > { %453 = vmatpush.msrb.mxu2 %v414_v63 }
 0x1f0   : > { %1156 = vmatmul.msk.f32.vlgmr.msrb.gmra.mxu2 %vm308_vm5, %v381_v48 }
 0x1f8   : > { %1157 = vmatmul.msk.f32.gmra.mxu2 %vm308_vm5, %v382_v59 }
 0x200   : > { %1158 = vmatmul.msk.f32.gmra.mxu2 %vm308_vm5, %v383_v52 }
 0x208   : > { %1159 = vmatmul.msk.f32.gmra.mxu2 %vm308_vm5, %v384_v55 }
 0x273   : > { %v455_v3 = vpop.f32.mrf.mxu2 }
 0x274   : > { %v467_v4 = vsub.f32 %v1489_v47, %v455_v3 }
 0x276   : > { %v471_v6 = vmul.f32 0.5, %v467_v4 }
 0x278   : > { %1164 = vmatmul.msk.f32.vlgmr.msrb.gmra.mxu1 %vm308_vm5, %v471_v6 }
 0x27b   : > { %v458_v7 = vpop.f32.mrf.mxu2 }
 0x27c   : > { %v468_v8 = vsub.f32 %v1486_v43, %v458_v7 }
 0x27e   : > { %v472_v9 = vmul.f32 0.5, %v468_v8 }
 0x280   : > { %1165 = vmatmul.msk.f32.gmra.mxu1 %vm308_vm5, %v472_v9 }
 0x283   : > { %v461_v10 = vpop.f32.mrf.mxu2 }
 0x284   : > { %v469_v11 = vsub.f32 %v1480_v38, %v461_v10 }
 0x286   : > { %v473_v12 = vmul.f32 0.5, %v469_v11 }
 0x288   : > { %1166 = vmatmul.msk.f32.gmra.mxu1 %vm308_vm5, %v473_v12 }
 0x28b   : > { %v464_v13 = vpop.f32.mrf.mxu2 }
 0x28c   : > { %v470_v14 = vsub.f32 %v1483_v39, %v464_v13 }
 0x28e   : > { %v474_v15 = vmul.f32 0.5, %v470_v14 }
 0x290   : > { %499 = vmatpush.msra.mxu3 %v474_v15  ;;  %1167 = vmatmul.msk.f32.gmra.mxu1 %vm308_vm5, %v474_v15 }
 0x292   : > { %500 = vmatpush.msra.mxu3 %v473_v12 }
 0x294   : > { %501 = vmatpush.msra.mxu3 %v472_v9 }
 0x296   : > { %502 = vmatpush.msra.mxu3 %v471_v6 }
 0x297   : > { %1160 = vmatmul.msk.f32.vlgmr.msra.gmra.mxu3 %vm308_vm5, %v414_v63 }
 0x29f   : > { %1161 = vmatmul.msk.f32.gmra.mxu3 %vm308_vm5, %v417_v60 }
 0x2a7   : > { %1162 = vmatmul.msk.f32.gmra.mxu3 %vm308_vm5, %v420_v62 }
 0x2af   : > { %1163 = vmatmul.msk.f32.gmra.mxu3 %vm308_vm5, %v423_v61 }
 0x2f5   : > { %v545_v16 = vpop.f32.mrf.mxu1 }
 0x2fd   : > { %v548_v17 = vpop.f32.mrf.mxu1 }
 0x305   : > { %v551_v18 = vpop.f32.mrf.mxu1 }
 0x30d   : > { %v554_v22 = vpop.f32.mrf.mxu1 }
 0x30e   : > { %671 = vmatpush.msra.mxu0 %v554_v22 }
 0x310   : > { %672 = vmatpush.msra.mxu0 %v551_v18 }
 0x312   : > { %673 = vmatpush.msra.mxu0 %v548_v17 }
 0x314   : > { %674 = vmatpush.msra.mxu0 %v545_v16 }
 0x31a   : > { %v504_v24 = vpop.f32.mrf.mxu3 }
 0x322   : > { %v507_v25 = vpop.f32.mrf.mxu3 }
 0x32a   : > { %v510_v26 = vpop.f32.mrf.mxu3 }
 0x332   : > { %v513_v27 = vpop.f32.mrf.mxu3 }
 0x333   : > { %581 = vmatpush.msra.mxu2 %v513_v27 }
 0x335   : > { %582 = vmatpush.msra.mxu2 %v510_v26 }
 0x337   : > { %583 = vmatpush.msra.mxu2 %v507_v25 }
 0x339   : > { %584 = vmatpush.msra.mxu2 %v504_v24 }
 0x33a   : > { %1168 = vmatmul.msk.f32.vlgmr.msra.gmra.mxu2 %vm308_vm5, %v545_v16 }
 0x342   : > { %1169 = vmatmul.msk.f32.gmra.mxu2 %vm308_vm5, %v548_v17 }
 0x34a   : > { %1170 = vmatmul.msk.f32.gmra.mxu2 %vm308_vm5, %v551_v18 }
 0x352   : > { %1171 = vmatmul.msk.f32.gmra.mxu2 %vm308_vm5, %v554_v22 }
 0x3bd   : > { %v586_v28 = vpop.f32.mrf.mxu2 }
 0x3be   : > { %v598_v29 = vsub.f32 %v1489_v47, %v586_v28  ;;  %v989_v28 = vld [vmem:[%s1688_s3 + $0x70] sm:$0xff] }
 0x3c0   : > { %v602_v30 = vmul.f32 0.5, %v598_v29 }
 0x3c2   : > { %1176 = vmatmul.msk.f32.vlgmr.msra.gmra.mxu0 %vm308_vm5, %v602_v30 }
 0x3c5   : > { %v589_v31 = vpop.f32.mrf.mxu2 }
 0x3c6   : > { %v599_v32 = vsub.f32 %v1486_v43, %v589_v31  ;;  %v1334_v31 = vmov 32.0  }
 0x3c7   : > { %1263 = vrcp.f32 %v1334_v31 }
 0x3c8   : > { %v603_v33 = vmul.f32 0.5, %v599_v32  ;;  %v988_v32 = vld [vmem:[%s1688_s3 + $0x68] sm:$0xff] }
 0x3ca   : > { %1177 = vmatmul.msk.f32.gmra.mxu0 %vm308_vm5, %v603_v33 }
 0x3cd   : > { %v592_v34 = vpop.f32.mrf.mxu2 }
 0x3ce   : > { %v600_v35 = vsub.f32 %v1480_v38, %v592_v34 }
 0x3d0   : > { %v604_v36 = vmul.f32 0.5, %v600_v35  ;;  %v987_v35 = vld [vmem:[%s1688_s3 + $0x60] sm:$0xff] }
 0x3d2   : > { %1178 = vmatmul.msk.f32.gmra.mxu0 %vm308_vm5, %v604_v36 }
 0x3d5   : > { %v595_v37 = vpop.f32.mrf.mxu2 }
 0x3d6   : > { %v601_v40 = vsub.f32 %v1483_v39, %v595_v37  ;;  %v986_v37 = vld [vmem:[%s1688_s3 + $0x58] sm:$0xff] }
 0x3d8   : > { %v605_v41 = vmul.f32 0.5, %v601_v40 }
 0x3da   : > { %630 = vmatpush.msrb.mxu3 %v605_v41  ;;  %1179 = vmatmul.msk.f32.gmra.mxu0 %vm308_vm5, %v605_v41 }
 0x3dc   : > { %631 = vmatpush.msrb.mxu3 %v604_v36 }
 0x3de   : > { %632 = vmatpush.msrb.mxu3 %v603_v33 }
 0x3e0   : > { %633 = vmatpush.msrb.mxu3 %v602_v30 }
 0x3e1   : > { %1172 = vmatmul.msk.f32.vlgmr.msrb.gmra.mxu3 %vm308_vm5, %v504_v24 }
 0x3e9   : > { %1173 = vmatmul.msk.f32.gmra.mxu3 %vm308_vm5, %v507_v25 }
 0x3f1   : > { %1174 = vmatmul.msk.f32.gmra.mxu3 %vm308_vm5, %v510_v26  ;;  %v946_v26 = vld [vmem:[%s1686_s1] sm:$0xff] }
 0x3f9   : > { %1175 = vmatmul.msk.f32.gmra.mxu3 %vm308_vm5, %v513_v27  ;;  %v990_v27 = vld [vmem:[%s1688_s3 + $0x78] sm:$0xff] }
 0x43f   : > { %v676_v42 = vpop.f32.mrf.mxu0 }
 0x447   : > { %v679_v44 = vpop.f32.mrf.mxu0 }
 0x44f   : > { %v682_v45 = vpop.f32.mrf.mxu0 }
 0x457   : > { %v685_v46 = vpop.f32.mrf.mxu0 }
 0x458   : > { %802 = vmatpush.msra.mxu3 %v685_v46 }
 0x45a   : > { %803 = vmatpush.msra.mxu3 %v682_v45 }
 0x45c   : > { %804 = vmatpush.msra.mxu3 %v679_v44 }
 0x45e   : > { %805 = vmatpush.msra.mxu3 %v676_v42 }
 0x460   : > { %992 = vmatpush.msrb.mxu3 %v990_v27 }
 0x462   : > { %993 = vmatpush.msrb.mxu3 %v989_v28 }
 0x464   : > { %v635_v49 = vpop.f32.mrf.mxu3  ;;  %994 = vmatpush.msrb.mxu3 %v988_v32 }
 0x466   : > { %995 = vmatpush.msrb.mxu3 %v987_v35 }
 0x468   : > { %996 = vmatpush.msrb.mxu3 %v986_v37 }
 0x46c   : > { %v638_v50 = vpop.f32.mrf.mxu3 }
 0x474   : > { %v641_v51 = vpop.f32.mrf.mxu3 }
 0x47c   : > { %v644_v53 = vpop.f32.mrf.mxu3 }
 0x47d   : > { %712 = vmatpush.msra.mxu1 %v644_v53 }
 0x47f   : > { %713 = vmatpush.msra.mxu1 %v641_v51 }
 0x481   : > { %714 = vmatpush.msra.mxu1 %v638_v50 }
 0x483   : > { %715 = vmatpush.msra.mxu1 %v635_v49 }
 0x484   : > { %1180 = vmatmul.msk.f32.vlgmr.msra.gmra.mxu1 %vm308_vm5, %v676_v42  ;;  %v1264_v42 = vpop.eup %1263 }
 0x485   : > { %vm943_vm12 = vweird.f32 %v1264_v42 }
 0x48c   : > { %1181 = vmatmul.msk.f32.gmra.mxu1 %vm308_vm5, %v679_v44  ;;  %v985_v44 = vld [vmem:[%s1688_s3 + $0x50] sm:$0xff] }
 0x48d   : > { %997 = vmatpush.msrb.mxu3 %v985_v44 }
 0x494   : > { %1182 = vmatmul.msk.f32.gmra.mxu1 %vm308_vm5, %v682_v45 }
 0x49c   : > { %1183 = vmatmul.msk.f32.gmra.mxu1 %vm308_vm5, %v685_v46 }
 0x501   : > { %v717_v54 = vpop.f32.mrf.mxu1 }
 0x502   : > { %v729_v55 = vsub.f32 %v1489_v47, %v717_v54  ;;  %v939_v54 = vmul.f32 32.0, %v1264_v42 }
 0x504   : > { %v733_v56 = vmul.f32 0.5, %v729_v55 }
 0x506   : > { %1188 = vmatmul.msk.f32.vlgmr.msra.gmra.mxu3 %vm308_vm5, %v733_v56 }
 0x509   : > { %v720_v52 = vpop.f32.mrf.mxu1 }
 0x50a   : > { %v730_v58 = vsub.f32 %v1486_v43, %v720_v52 }
 0x50c   : > { %v734_v59 = vmul.f32 0.5, %v730_v58 }
 0x50e   : > { %1189 = vmatmul.msk.f32.gmra.mxu3 %vm308_vm5, %v734_v59 }
 0x511   : > { %v723_v48 = vpop.f32.mrf.mxu1 }
 0x512   : > { %v731_v60 = vsub.f32 %v1480_v38, %v723_v48 }
 0x514   : > { %v735_v61 = vmul.f32 0.5, %v731_v60  ;;  %v940_v60 = vsub.f32 1.0, %v939_v54 }
 0x516   : > { %1190 = vmatmul.msk.f32.gmra.mxu3 %vm308_vm5, %v735_v61 }
 0x519   : > { %v726_v62 = vpop.f32.mrf.mxu1 }
 0x51a   : > { %v732_v63 = vsub.f32 %v1483_v39, %v726_v62  ;;  %v981_v62 = vld [vmem:[%s1688_s3 + $0x30] sm:$0xff] }
 0x51c   : > { %v736_v3 = vmul.f32 0.5, %v732_v63 }
 0x51e   : > { %761 = vmatpush.msrb.mxu2 %v736_v3  ;;  %1191 = vmatmul.msk.f32.gmra.mxu3 %vm308_vm5, %v736_v3  ;;  %v941_v3 = vmul.f32 %v1264_v42, %v940_v60 }
 0x520   : > { %762 = vmatpush.msrb.mxu2 %v735_v61 }
 0x522   : > { %763 = vmatpush.msrb.mxu2 %v734_v59  ;;  %v982_v59 = vld [vmem:[%s1688_s3 + $0x38] sm:$0xff] }
 0x524   : > { %764 = vmatpush.msrb.mxu2 %v733_v56  ;;  %v983_v56 = vld [vmem:[%s1688_s3 + $0x40] sm:$0xff] }
 0x525   : > { %1184 = vmatmul.msk.f32.vlgmr.msrb.gmra.mxu2 %vm308_vm5, %v635_v49  ;;  %v984_v49 = vld [vmem:[%s1688_s3 + $0x48] sm:$0xff] }
 0x526   : > { %998 = vmatpush.msrb.mxu3 %v984_v49 }
 0x528   : > { %999 = vmatpush.msrb.mxu3 %v983_v56 }
 0x52a   : > { %1000 = vmatpush.msrb.mxu3 %v982_v59 }
 0x52c   : > { %1001 = vmatpush.msrb.mxu3 %v981_v62 }
 0x52d   : > { %1185 = vmatmul.msk.f32.gmra.mxu2 %vm308_vm5, %v638_v50 }
 0x535   : > { %1186 = vmatmul.msk.f32.gmra.mxu2 %vm308_vm5, %v641_v51 }
 0x53d   : > { %1187 = vmatmul.msk.f32.gmra.mxu2 %vm308_vm5, %v644_v53 }
 0x589   : > { %v807_v9 = vpop.f32.mrf.mxu3 }
 0x591   : > { %v810_v10 = vpop.f32.mrf.mxu3 }
 0x599   : > { %v813_v11 = vpop.f32.mrf.mxu3 }
 0x5a1   : > { %v816_v12 = vpop.f32.mrf.mxu3 }
 0x5a8   : > { %v766_v4 = vpop.f32.mrf.mxu2 }
 0x5b0   : > { %v769_v6 = vpop.f32.mrf.mxu2 }
 0x5b8   : > { %v772_v7 = vpop.f32.mrf.mxu2 }
 0x5c0   : > { %v775_v8 = vpop.f32.mrf.mxu2 }
 0x5c1   : > { %843 = vmatpush.msrb.mxu0 %v775_v8 }
 0x5c3   : > { %844 = vmatpush.msrb.mxu0 %v772_v7 }
 0x5c5   : > { %845 = vmatpush.msrb.mxu0 %v769_v6 }
 0x5c7   : > { %846 = vmatpush.msrb.mxu0 %v766_v4 }
 0x5c8   : > { %1192 = vmatmul.msk.f32.vlgmr.msrb.gmra.mxu0 %vm308_vm5, %v807_v9  ;;  %v942_v9 = vadd.f32 %v1264_v42, %v941_v3 }
 0x5d0   : > { %1193 = vmatmul.msk.f32.gmra.mxu0 %vm308_vm5, %v810_v10 }
 0x5d8   : > { %1194 = vmatmul.msk.f32.gmra.mxu0 %vm308_vm5, %v813_v11 }
 0x5e0   : > { %1195 = vmatmul.msk.f32.gmra.mxu0 %vm308_vm5, %v816_v12  ;;  %v944_v12 = vsel %vm943_vm12, %v1264_v42, %v942_v9 }
 0x645   : > { %v848_v13 = vpop.f32.mrf.mxu0 }
 0x646   : > { %v860_v24 = vsub.f32 %v1489_v47, %v848_v13  ;;  %v947_v47 = vld [vmem:[%s1686_s1 + $0x8] sm:$0xff] }
 0x64d   : > { %v851_v14 = vpop.f32.mrf.mxu0 }
 0x64e   : > { %v861_v22 = vsub.f32 %v1486_v43, %v851_v14  ;;  %v948_v43 = vld [vmem:[%s1686_s1 + $0x10] sm:$0xff] }
 0x655   : > { %v854_v15 = vpop.f32.mrf.mxu0 }
 0x656   : > { %v862_v18 = vsub.f32 %v1480_v38, %v854_v15  ;;  %v949_v38 = vld [vmem:[%s1686_s1 + $0x18] sm:$0xff]  ;;  %v977_v15 = vld [vmem:[%s1688_s3 + $0x10] sm:$0xff] }
 0x657   : > { %966 = vmatpush.msra.mxu2 %v949_v38  ;;  %v991_v38 = vld [vmem:[%s1689_s4] sm:$0x1] }
 0x659   : > { %967 = vmatpush.msra.mxu2 %v948_v43 }
 0x65b   : > { %968 = vmatpush.msra.mxu2 %v947_v47 }
 0x65d   : > { %v857_v16 = vpop.f32.mrf.mxu0  ;;  %969 = vmatpush.msra.mxu2 %v946_v26 }
 0x65e   : > { %v863_v17 = vsub.f32 %v1483_v39, %v857_v16  ;;  %v976_v16 = vld [vmem:[%s1688_s3 + $0x8] sm:$0xff] }
 0x660   : > { %888 = vmatpush.msrb.mxu1 %v863_v17  ;;  %v975_v17 = vld [vmem:[%s1688_s3] sm:$0xff] }
 0x662   : > { %889 = vmatpush.msrb.mxu1 %v862_v18  ;;  %v950_v18 = vld [vmem:[%s1687_s2] sm:$0x1] }
 0x664   : > { %890 = vmatpush.msrb.mxu1 %v861_v22 }
 0x666   : > { %891 = vmatpush.msrb.mxu1 %v860_v24 }
 0x667   : > { %1196 = vmatmul.msk.f32.vlgmr.msrb.gmra.mxu1 %vm308_vm5, %v766_v4 }
 0x66f   : > { %1197 = vmatmul.msk.f32.gmra.mxu1 %vm308_vm5, %v769_v6  ;;  %v979_v6 = vld [vmem:[%s1688_s3 + $0x20] sm:$0xff] }
 0x677   : > { %1198 = vmatmul.msk.f32.gmra.mxu1 %vm308_vm5, %v772_v7 }
 0x67f   : > { %1199 = vmatmul.msk.f32.gmra.mxu1 %vm308_vm5, %v775_v8  ;;  %v978_v8 = vld [vmem:[%s1688_s3 + $0x18] sm:$0xff] }
 0x6e4   : > { %v893_v25 = vpop.f32.mrf.mxu1 }
 0x6e5   : > { %v905_v33 = vmul.f32 0.5, %v893_v25 }
 0x6e7   : > { %v921_v40 = vmul.f32 %v1495_v57, %v905_v33 }
 0x6e9   : > { %v925_v50 = vsel %vm308_vm5, %v921_v40, 0.0 }
 0x6ec   : > { %v896_v39 = vpop.f32.mrf.mxu1 }
 0x6ed   : > { %v906_v29 = vmul.f32 0.5, %v896_v39 }
 0x6ef   : > { %v922_v36 = vmul.f32 %v1495_v57, %v906_v29 }
 0x6f1   : > { %v926_v45 = vsel %vm308_vm5, %v922_v36, 0.0 }
 0x6f2   : > { %v927_v55 = vadd.f32 %v926_v45, %v925_v50 }
 0x6f4   : > { %v899_v30 = vpop.f32.mrf.mxu1 }
 0x6f5   : > { %v907_v34 = vmul.f32 0.5, %v899_v30 }
 0x6f7   : > { %v923_v41 = vmul.f32 %v1495_v57, %v907_v34 }
 0x6f9   : > { %v928_v51 = vsel %vm308_vm5, %v923_v41, 0.0 }
 0x6fa   : > { %v929_v58 = vadd.f32 %v928_v51, %v927_v55 }
 0x6fc   : > { %v902_v46 = vpop.f32.mrf.mxu1 }
 0x6fd   : > { %v908_v53 = vmul.f32 0.5, %v902_v46 }
 0x6ff   : > { %v924_v52 = vmul.f32 %v1495_v57, %v908_v53  ;;  %v980_v57 = vld [vmem:[%s1688_s3 + $0x28] sm:$0xff] }
 0x700   : > { %1002 = vmatpush.msrb.mxu3 %v980_v57 }
 0x701   : > { %v930_v48 = vsel %vm308_vm5, %v924_v52, 0.0 }
 0x702   : > { %v931_v61 = vadd.f32 %v930_v48, %v929_v58  ;;  %1003 = vmatpush.msrb.mxu3 %v979_v6 }
 0x704   : > { %v932_v63 = vrot.slane %v931_v61, 4  ;;  %1004 = vmatpush.msrb.mxu3 %v978_v8 }
 0x706   : > { %v933_v4 = vadd.f32 %v932_v63, %v931_v61  ;;  %1005 = vmatpush.msrb.mxu3 %v977_v15 }
 0x708   : > { %v934_v7 = vrot.slane %v933_v4, 2  ;;  %1006 = vmatpush.msrb.mxu3 %v976_v16 }
 0x70a   : > { %v935_v10 = vadd.f32 %v934_v7, %v933_v4  ;;  %1007 = vmatpush.msrb.mxu3 %v975_v17 }
 0x70c   : > { %v936_v11 = vrot.slane %v935_v10, 1 }
 0x70e   : > { %v937_v13 = vadd.f32 %v936_v11, %v935_v10 }
 0x710   : > { %v945_v14 = vmul.f32 %v944_v12, %v937_v13 }
 0x712   : > { %1200 = vmatmul.msk.f32.vlgmr.msra.gmra.mxu2 %vm308_vm5, %v945_v14 }
 0x795   : > { %v971_v22 = vpop.f32.mrf.mxu2 }
 0x796   : > { %v972_v24 = vadd.f32 %v971_v22, %v950_v18 }
 0x798   : > { %v974_v25 = vmax.f32 %v972_v24, 0.0 }
 0x79a   : > { %1008 = vmatmul.f32.vlgmr.msrb.gmra.mxu3 %v974_v25 }
 0x81d   : > { %v1009_v39 = vpop.f32.mrf.mxu3 }
 0x81e   : > { %v1010_v43 = vadd.f32 %v1009_v39, %v991_v38 }
 0x820   : > { %v1012_v47 = vsub.f32 0.0, %v1010_v43 }
 0x822   : > { %v1013_v26 = vmul.f32 1.442695, %v1012_v47 }
 0x824   : > { %1265 = vpow2.f32 %v1013_v26 }
 0x82a   : > { %v1266_v27 = vpop.eup %1265 }
 0x82b   : > { %v1015_v28 = vadd.f32 1.0, %v1266_v27 }
 0x82d   : > { %1267 = vrcp.f32 %v1015_v28  ;;  %v1027_v32 = vand.u32 2147483648, %v1015_v28  ;;  %v1025_v34 = vand.u32 2147483647, %v1015_v28  ;;  %vm1021_vm14 = vweird.f32 %v1015_v28 }
 0x82f   : > { %v1028_v36 = vor.u32 1.1754944e-38, %v1027_v32  ;;  %vm1026_vm1 = vcmp.eq.f32.partialorder %v1025_v34, 8.507059e+37 }
 0x833   : > { %v1268_v29 = vpop.eup %1267 }
 0x834   : > { %v1017_v30 = vmul.f32 %v1268_v29, %v1015_v28  ;;  %vm1022_vm13 = vweird.f32 %v1268_v29 }
 0x835   : > { %vm1023_vm15 = vmor %vm1021_vm14, %vm1022_vm13 }
 0x836   : > { %v1018_v31 = vsub.f32 1.0, %v1017_v30 }
 0x838   : > { %v1019_v33 = vmul.f32 %v1268_v29, %v1018_v31 }
 0x83a   : > { %v1020_v35 = vadd.f32 %v1268_v29, %v1019_v33 }
 0x83c   : > { %v1024_v37 = vsel %vm1023_vm15, %v1268_v29, %v1020_v35 }
 0x83d   : > { %v1029_v40 = vsel %vm1026_vm1, %v1028_v36, %v1024_v37 }
 0x83e   : > { %v1030_v41 = vperm.slane %v1029_v40, 0 }
 0x840   : > { %v1033_v42 = vmul.f32 %v1030_v41, %v1454_v20  ;;  %v1032_v44 = vmul.f32 %v1030_v41, %v1456_v21  ;;  %v1031_v45 = vmul.f32 %v1030_v41, %v1452_v19  ;;  %v1034_v51 = vmul.f32 %v1030_v41, %v1458_v23 }
 0x842   : > { %v1041_v46 = vsel %vm308_vm5, %v1033_v42, 0.0  ;;  %v1038_v49 = vsel %vm308_vm5, %v1032_v44, 0.0  ;;  %v1035_v50 = vsel %vm308_vm5, %v1031_v45, 0.0  ;;  %v1044_v53 = vsel %vm308_vm5, %v1034_v51, 0.0 }
 0x843   : > { %1042 = vadd.xlane.f32.xlu1 %v1041_v46  ;;  %1039 = vadd.xlane.f32.xlu0 %v1038_v49 }
 0x844   : > { %1036 = vadd.xlane.f32.xlu2 %v1035_v50 }
 0x84c   : > { %1045 = vadd.xlane.f32.xlu2 %v1044_v53 }
 0x8b6   : > { %v1043_v20 = vpop.xlane.xlu1 %1042  ;;  %v1040_v21 = vpop.xlane.xlu0 %1039 }
 0x8b7   : > { %v1053_v19 = vmul.f32 %v1043_v20, %v1424_v2  ;;  %v1052_v54 = vmul.f32 %v1040_v21, %v1432_v5  ;;  %v1037_v55 = vpop.xlane.xlu2 %1036 }
 0x8b8   : > { %v1051_v56 = vmul.f32 %v1037_v55, %v1422_v1 }
 0x8b9   : > { %1057 = vst.msk [vmem:[%s217_s9 + $0x10] sm:$0xff] %vm246_vm0, %v1053_v19 }
 0x8ba   : > { %1056 = vst.msk [vmem:[%s217_s9 + $0x8] sm:$0xff] %vm246_vm0, %v1052_v54 }
 0x8bb   : > { %1055 = vst.msk [vmem:[%s217_s9] sm:$0xff] %vm246_vm0, %v1051_v56 }
 0x8bf   : > { %v1046_v2 = vpop.xlane.xlu2 %1045 }
 0x8c0   : > { %v1054_v5 = vmul.f32 %v1046_v2, %v1420_v0 }
 0x8c2   : > { %1058 = vst.msk [vmem:[%s217_s9 + $0x18] sm:$0xff] %vm246_vm0, %v1054_v5 }
 0x8c3   : > { %1296 = shalt.err (!%p1293_p3)
}
 0x8c4   : > { %s1335_s6 = smov 128   ;;  %s1336_s7 = smov 8  }
 0x8c5   : > { %1216 = dma.vmem_to_hbm [thread:$0]  (%p1405_p5), %s1073_s13, 512, %s1075_s14, %s1060_s22, %s1335_s6, %s1335_s6, %s1336_s7  }
 0x8c6 PF: > { %p1222_p4 = scmp.ge.s32.totalorder %s1331_s21, 2  ;;  %s1089_s8 = sand.u32 1, %s1319_s18  }
 0x8c7   : > { %s1090_s9 = scalar_lea.sflag [#allocation3], %s1089_s8 }
 0x8c8   : > { %p1219_p7 = pnand %p1222_p4, %p1409_p6 }
 0x8ca   : > { %p1220_p8 = pneg %p1219_p7 }
 0x8cc   : > { %1314 = dma.done.wait (%p1220_p8), %s1090_s9, 512  }
 0x8cd   : > { %1316 = vsyncadd (%p1220_p8), %s1090_s9, 4294966784  ;;  %p15_p9 = scmp.ge.s32.totalorder %s1392_s24, 4   ;;  %s1693_s18 = smov %s1323_s19 }
 0x8ce   : > { %s1694_s19 = smov %s1327_s20  ;;  %s1695_s20 = smov %s1403_s27 }
 0x8cf   : > { %s1696_s21 = smov %s1392_s24  ;;  %17 = sbr.rel (!%p15_p9) target bundleno = 3 (0x3), region = 75 }
 0x8d4   :  { %1096 = vsyncpa [#allocation3], 1 }
 0x8d5   :  { %1098 = vsyncpa [#allocation3 + $0x1], 1 }

</bundles_post_ra>
